<compile_context>
chip_gen: v5e
topology: v5e:2x2
jax: 0.10.0
libtpu: 0.0.40
codegen_flags: <defaults>
</compile_context>

<pallas_src>
import jax
import jax.numpy as jnp
from jax.experimental import pallas as pl
from jax.experimental.pallas import tpu as pltpu

ROWS_PER_STEP = 128            # tokens gathered per grid step (fast path)
GATHER_ROWS = 32               # concurrent row DMAs per grid step (large-table path)
_VMEM_TABLE_BYTES = 4 * 1024 * 1024   # "table fits comfortably in VMEM" threshold


def _round_up(x, m):
    return ((x + m - 1) // m) * m


def _choose_rows(n, rows_per_step):
    if n >= rows_per_step:
        return rows_per_step
    # Small token counts: largest sublane-aligned block (>= 8) not far above n.
    return max(8, (n // 8) * 8)


# --------------------------------------------------------------------------- #
# Fast path: VMEM-resident table + one-hot MXU gather
# --------------------------------------------------------------------------- #
def _onehot_gather_kernel(ids_ref, table_ref, out_ref):
    # ids_ref:   (R, 1)  int32 token ids for this step
    # table_ref: (Vp, Hp) full embedding table, resident in VMEM (grid-invariant)
    # out_ref:   (R, Hp) gathered embeddings
    r = out_ref.shape[0]
    vpad = table_ref.shape[0]
    ids = ids_ref[...]                                              # (R, 1)
    iota = jax.lax.broadcasted_iota(jnp.int32, (r, vpad), 1)        # (R, Vp)
    onehot = (ids == iota).astype(table_ref.dtype)                  # (R, Vp)
    # HIGHEST precision keeps the f32 gather (effectively) exact on the MXU.
    out_ref[...] = jnp.dot(
        onehot, table_ref[...],
        precision=jax.lax.Precision.HIGHEST,
        preferred_element_type=jnp.float32,
    ).astype(out_ref.dtype)


def _embed_small_table(flat_ids, table, rows_per_step):
    n = flat_ids.shape[0]
    vocab, hidden_pad = table.shape
    vpad = _round_up(vocab, 8)
    if vpad != vocab:
        table = jnp.pad(table, ((0, vpad - vocab), (0, 0)))

    r = _choose_rows(n, rows_per_step)
    grid = (pl.cdiv(n, r),)
    ids2d = flat_ids.reshape(n, 1)

    return pl.pallas_call(
        _onehot_gather_kernel,
        out_shape=jax.ShapeDtypeStruct((n, hidden_pad), table.dtype),
        grid_spec=pltpu.PrefetchScalarGridSpec(
            num_scalar_prefetch=0,
            grid=grid,
            in_specs=[
                pl.BlockSpec((r, 1), lambda i: (i, 0)),              # token ids
                pl.BlockSpec((vpad, hidden_pad), lambda i: (0, 0)),  # resident table
            ],
            out_specs=pl.BlockSpec((r, hidden_pad), lambda i: (i, 0)),
        ),
        compiler_params=pltpu.CompilerParams(
            dimension_semantics=("parallel",)),
        cost_estimate=pl.CostEstimate(
            flops=2 * n * vpad * hidden_pad,
            transcendentals=0,
            bytes_accessed=(vpad * hidden_pad + n * hidden_pad) * table.dtype.itemsize
                           + 4 * n),
    )(ids2d, table)


# --------------------------------------------------------------------------- #
# Large-table path: HBM row gather via concurrent manual DMAs
# --------------------------------------------------------------------------- #
def _make_hbm_gather_kernel(rows_per_step):
    def kernel(ids_ref, table_hbm, out_ref, row_buf, sems):
        # ids_ref:   (n_pad,) int32 in SMEM (scalar prefetch)
        # table_hbm: (vocab, Hp) embedding table left in HBM (pl.ANY)
        # out_ref:   (R, Hp) output block
        # row_buf:   (R, Hp) VMEM scratch; sems: R DMA semaphores
        base = pl.program_id(0) * rows_per_step
        # Issue all R row fetches so they are in flight together (hides HBM
        # random-access latency), then wait once for all of them.
        for k in range(rows_per_step):
            idx = ids_ref[base + k]
            pltpu.make_async_copy(
                table_hbm.at[pl.ds(idx, 1), :],
                row_buf.at[pl.ds(k, 1), :],
                sems.at[k]).start()
        for k in range(rows_per_step):
            idx = ids_ref[base + k]
            pltpu.make_async_copy(
                table_hbm.at[pl.ds(idx, 1), :],
                row_buf.at[pl.ds(k, 1), :],
                sems.at[k]).wait()
        # Single unmasked lane-dense block store (no per-row concat / shuffles).
        out_ref[...] = row_buf[...]
    return kernel


def _embed_hbm_gather(flat_ids, table, rows_per_step):
    n = flat_ids.shape[0]
    vocab, hidden_pad = table.shape
    # Pad the ids (only) so every SMEM read inside the kernel is in bounds; the
    # output keeps n rows and the trailing partial block is masked on writeback.
    # NOTE: for very long sequences chunk the ids to bound SMEM usage.
    n_pad = _round_up(n, rows_per_step)
    if n_pad != n:
        flat_ids = jnp.pad(flat_ids, (0, n_pad - n))
    grid = (n_pad // rows_per_step,)

    return pl.pallas_call(
        _make_hbm_gather_kernel(rows_per_step),
        out_shape=jax.ShapeDtypeStruct((n, hidden_pad), table.dtype),
        grid_spec=pltpu.PrefetchScalarGridSpec(
            num_scalar_prefetch=1,
            grid=grid,
            in_specs=[pl.BlockSpec(memory_space=pl.ANY)],            # table in HBM
            out_specs=pl.BlockSpec((rows_per_step, hidden_pad),
                                   lambda i, ids: (i, 0)),
            scratch_shapes=[
                pltpu.VMEM((rows_per_step, hidden_pad), table.dtype),
                pltpu.SemaphoreType.DMA((rows_per_step,)),
            ],
        ),
        compiler_params=pltpu.CompilerParams(
            dimension_semantics=("arbitrary",)),
        cost_estimate=pl.CostEstimate(
            flops=0,
            transcendentals=0,
            bytes_accessed=2 * n_pad * hidden_pad * table.dtype.itemsize + 4 * n_pad),
    )(flat_ids, table)


# --------------------------------------------------------------------------- #
# Public wrapper: TextEmbedding.forward
# --------------------------------------------------------------------------- #
def text_embedding_forward(x, table, *, rows_per_step=ROWS_PER_STEP,
                           force_hbm_gather=False):
    """x: integer index array (any shape); table: [vocab_size, hidden_dim]."""
    vocab, hidden = table.shape
    flat_ids = x.reshape(-1).astype(jnp.int32)
    # Clamp like jnp.take on TPU; also guarantees no OOB row DMA on the HBM path.
    flat_ids = jnp.clip(flat_ids, 0, vocab - 1)
    n = flat_ids.shape[0]

    # Keep the output block lane-dense (pad hidden to a multiple of 128 if needed).
    hidden_pad = _round_up(hidden, 128)
    if hidden_pad != hidden:
        table = jnp.pad(table, ((0, 0), (0, hidden_pad - hidden)))

    table_bytes = _round_up(vocab, 8) * hidden_pad * table.dtype.itemsize
    if table_bytes <= _VMEM_TABLE_BYTES and not force_hbm_gather:
        out = _embed_small_table(flat_ids, table, rows_per_step)
    else:
        out = _embed_hbm_gather(flat_ids, table, min(rows_per_step, GATHER_ROWS))

    if hidden_pad != hidden:
        out = out[:, :hidden]
    return out.reshape(x.shape + (hidden,))


def reference_forward(x, table):
    return jnp.take(table, x, axis=0)


if __name__ == "__main__":
    key = jax.random.PRNGKey(0)
    k_table, k_ids = jax.random.split(key)

    vocab_size, hidden_dim = 50, 256    # hidden_dim matches the module default
    batch, seq = 2, 9                   # 18 tokens -> exercises partial-block masking

    table = jax.random.normal(k_table, (vocab_size, hidden_dim), jnp.float32)
    x = jax.random.randint(k_ids, (batch, seq), 0, vocab_size, jnp.int32)

    ref = reference_forward(x, table)

    # Fast path: VMEM-resident table + one-hot MXU gather.
    out_fast = jax.block_until_ready(text_embedding_forward(x, table))
    assert out_fast.shape == (batch, seq, hidden_dim)
    assert jnp.allclose(out_fast, ref, atol=1e-2, rtol=1e-2)  # exact w/ HIGHEST; loose tol for safety

    # Large-table fallback (forced here for coverage): HBM row gather via manual DMA.
    out_gather = jax.block_until_ready(
        text_embedding_forward(x, table, force_hbm_gather=True))
    assert out_gather.shape == (batch, seq, hidden_dim)
    assert jnp.array_equal(out_gather, ref)

    print("KERNEL_OK")
</pallas_src>

<mosaic_0001>
module attributes {stable_mosaic.version = 11 : i64} {
  func.func @_onehot_gather_kernel(%arg0: i32, %arg1: memref<16x1xi32, #tpu.memory_space<vmem>>, %arg2: memref<56x256xf32, #tpu.memory_space<vmem>>, %arg3: memref<16x256xf32, #tpu.memory_space<vmem>>) attributes {dimension_semantics = [#tpu.dimension_semantics<parallel>], iteration_bounds = array<i64: 2>, scalar_prefetch = 0 : i64, scratch_operands = 0 : i64, tpu.core_type = #tpu.core_type<tc>, window_params = [{transform_indices = @transform_0, window_bounds = array<i64: 16, 1>}, {pipeline_mode = #tpu.pipeline_mode<synchronous>, transform_indices = @transform_1, window_bounds = array<i64: 56, 256>}, {transform_indices = @transform_2, window_bounds = array<i64: 16, 256>}]} {
    %c0 = arith.constant 0 : index
    %c0_0 = arith.constant 0 : index
    %0 = vector.load %arg1[%c0, %c0_0] : memref<16x1xi32, #tpu.memory_space<vmem>>, vector<16x1xi32>
    %1 = tpu.iota {dimensions = array<i32: 1>} : vector<16x56xi32>
    %2 = vector.broadcast %0 : vector<16x1xi32> to vector<16x56xi32>
    %3 = arith.cmpi eq, %2, %1 : vector<16x56xi32>
    %4 = arith.extui %3 : vector<16x56xi1> to vector<16x56xi32>
    %5 = arith.sitofp %4 : vector<16x56xi32> to vector<16x56xf32>
    %c0_1 = arith.constant 0 : index
    %c0_2 = arith.constant 0 : index
    %6 = vector.load %arg2[%c0_1, %c0_2] : memref<56x256xf32, #tpu.memory_space<vmem>>, vector<56x256xf32>
    %cst = arith.constant dense<0.000000e+00> : vector<16x256xf32>
    %7 = tpu.matmul %5, %6, %cst {dimension_numbers = #tpu.dot_dimension_numbers<[1], [0], [0], [1], [0, 0, 1, 1], [], []>, precision = #tpu.contract_precision<fp32>} : vector<16x56xf32>, vector<56x256xf32>, vector<16x256xf32> -> vector<16x256xf32>
    %c0_3 = arith.constant 0 : index
    %c0_4 = arith.constant 0 : index
    %8 = vector.load %arg3[%c0_3, %c0_4] : memref<16x256xf32, #tpu.memory_space<vmem>>, vector<16x256xf32>
    tpu.vector_store %arg3[%c0_3, %c0_4], %7 {strides = array<i32>} : memref<16x256xf32, #tpu.memory_space<vmem>>, vector<16x256xf32>,
    return
  }
  func.func @transform_0(%arg0: i32) -> (i32, i32) {
    %c0_i32 = arith.constant 0 : i32
    %c0_i32_0 = arith.constant 0 : i32
    return %arg0, %c0_i32 : i32, i32
  }
  func.func @transform_1(%arg0: i32) -> (i32, i32) {
    %c0_i32 = arith.constant 0 : i32
    %c0_i32_0 = arith.constant 0 : i32
    %c0_i32_1 = arith.constant 0 : i32
    return %c0_i32, %c0_i32_0 : i32, i32
  }
  func.func @transform_2(%arg0: i32) -> (i32, i32) {
    %c0_i32 = arith.constant 0 : i32
    %c0_i32_0 = arith.constant 0 : i32
    return %arg0, %c0_i32 : i32, i32
  }
}

</mosaic_0001>

<bundles_post_ra>
// kernel: tpu_custom_call.1
= control target key start
LH: loop header
LB: loop body
LE: loop exit
PB: predicated region body
PF: predicated region fallthrough
CT: control target
= control target key end

     0   :  { %7 = vsyncpa [#allocation3], 0  ;;  %s1357_s0 = inlined_call_operand.vmem [shape: s32[18,1], index: 0, kind: input, shape index: {}]   ;;  %s1358_s1 = inlined_call_operand.hbm [shape: f32[56,256], index: 1, kind: input, shape index: {}]   ;;  %s1359_s2 = inlined_call_operand.hbm [shape: f32[18,256], index: 2, kind: output, shape index: {}]  }
   0x1   :  { %8 = vsyncpa [#allocation4], 0 }
   0x2   :  { %10 = vsyncpa [#allocation4 + $0x1], 0  ;;  %s1062_s9 = smov 0   ;;  %s1064_s10 = smov 0  }
   0x3   :  { %s1066_s11 = smov 0   ;;  %s1068_s12 = smov 0  }
   0x4 LB: > { %s1083_s13 = sadd.s32 4294967295, %s1037_s12   ;;  %s837_s14 = sadd.s32 4294967294, %s1037_s12   ;;  %s1037_s12 = sphi %s1068_s12, %s1366_s12   ;;  %s1033_s11 = sphi %s1066_s11, %s1365_s11   ;;  %s1029_s10 = sphi %s1064_s10, %s1364_s10   ;;  %s1025_s9 = sphi %s1062_s9, %s1363_s9  }
   0x5   : > { %s1087_s15 = sadd.s32 1, %s1037_s12   ;;  %s70_s16 = sadd.s32 1, %s1033_s11 }
   0x6   : > { %s67_s17 = ssub.s32 %s1037_s12, %s1087_s15  ;;  %p80_p0 = scmp.ne.s32.totalorder %s1033_s11, %s1029_s10 }
   0x7   : > { %p68_p1 = scmp.eq.s32.totalorder %s67_s17, 0  ;;  %p81_p2 = scmp.eq.s32.totalorder %s1083_s13, 1 }
   0x8   : > { %p86_p3 = scmp.ne.s32.totalorder %s1029_s10, %s1025_s9  ;;  %p87_p4 = scmp.eq.s32.totalorder %s837_s14, 1 }
   0x9   : > { %s1098_s18 = scalar_select %p68_p1, %s1033_s11, %s70_s16  }
   0xa   : > { %p1100_p5 = por %p81_p2, %p80_p0  ;;  %p1104_p6 = por %p87_p4, %p86_p3 }
   0xb   : > { %p838_p7 = scmp.ge.s32.totalorder %s1037_s12, 1  ;;  %p94_p8 = scmp.lt.s32.totalorder %s1037_s12, 3 }
   0xc   : > { %p887_p9 = scmp.eq.s32.totalorder %s1083_s13, 0  ;;  %s105_s23 = sshll.u32 %s1358_s1, 4  ;;  %s106_s23 = int_to_ptr.hbm [resolvable:$true] %s105_s23 }
   0xd   : > { %p95_p10 = pnand %p838_p7, %p94_p8  ;;  %s1039_s24 = smov [#allocation2]  }
   0xe   : > { %s107_s25 = sshll.u32 %s1039_s24, 4  ;;  %s1040_s26 = smov 256   ;;  %s108_s25 = int_to_ptr.vmem [resolvable:$true] %s107_s25 }
   0xf   : > { %p879_p11 = pneg %p95_p10  ;;  %s1041_s27 = smov 16  }
  0x10   : > { %140 = sbr.rel (%p95_p10) target bundleno = 362 (0x16a), region = 28 }
  0x11   : > { %p880_p12 = pnand %p887_p9, %p879_p11 }
  0x13   : > { %882 = dma.hbm_to_vmem [thread:$0]  (!%p880_p12), %s106_s23, 1792, %s108_s25, [#allocation3], %s1040_s26, %s1040_s26, %s1041_s27  }
  0x15   : > { %1016 = dma.done.wait (%p887_p9), [#allocation3], 1792  }
  0x16   : > { %1018 = vsyncadd (%p887_p9), [#allocation3], 4294965504  ;;  %s1121_s28 = sshll.u32 %s1083_s13, 1  ;;  %v1042_v0 = vmov 0   ;;  %v215_v2 = vld [vmem:[#allocation2 + $0x60] sm:$0xff]  ;;  %v213_v4 = vld [vmem:[#allocation2 + $0x50] sm:$0xff] }
  0x17   : > { %929 = vset.pattern.permute.xlu0 %v1042_v0  ;;  %p172_p13 = scmp.lt.s32.totalorder %s1121_s28, 2  ;;  %v1128_v3 = vand.u32 4294901760, %v215_v2  ;;  %v211_v5 = vld [vmem:[#allocation2 + $0x40] sm:$0xff]  ;;  %v209_v6 = vld [vmem:[#allocation2 + $0x30] sm:$0xff]  ;;  %v1130_v7 = vand.u32 4294901760, %v213_v4  ;;  %v216_v45 = vld [vmem:[#allocation2 + $0x68] sm:$0xff] }
  0x18   : > { %v1132_v8 = vand.u32 4294901760, %v211_v5  ;;  %v1134_v9 = vand.u32 4294901760, %v209_v6  ;;  %v207_v10 = vld [vmem:[#allocation2 + $0x20] sm:$0xff]  ;;  %v205_v11 = vld [vmem:[#allocation2 + $0x10] sm:$0xff]  ;;  %v1168_v46 = vand.u32 4294901760, %v216_v45  ;;  %v214_v47 = vld [vmem:[#allocation2 + $0x58] sm:$0xff] }
  0x19   : > { %s173_s29 = scalar_select %p172_p13, %s1121_s28, 2  ;;  %v274_v12 = vsub.f32 %v215_v2, %v1128_v3  ;;  %375 = vmatpush.msra.mxu3 %v1128_v3  ;;  %v1138_v13 = vand.u32 4294901760, %v207_v10  ;;  %234 = vmatpush.msra.mxu0 %v1128_v3  ;;  %v1141_v14 = vand.u32 4294901760, %v205_v11  ;;  %v280_v15 = vsub.f32 %v213_v4, %v1130_v7  ;;  %v203_v39 = vld [vmem:[#allocation2] sm:$0xff]  ;;  %v212_v50 = vld [vmem:[#allocation2 + $0x48] sm:$0xff]  ;;  %v210_v54 = vld [vmem:[#allocation2 + $0x38] sm:$0xff] }
  0x1a   : > { %v286_v16 = vsub.f32 %v211_v5, %v1132_v8  ;;  %v292_v17 = vsub.f32 %v209_v6, %v1134_v9  ;;  %v245_v40 = vand.u32 4294901760, %v203_v39  ;;  %v1172_v48 = vand.u32 4294901760, %v214_v47  ;;  %v208_v59 = vld [vmem:[#allocation2 + $0x28] sm:$0xff]  ;;  %s164_s6 = sand.u32 1, %s1029_s10   ;;  %s747_s16 = ssub.s32 (%p1100_p5), 3, %s1121_s28 }
  0x1b   : > { %s845_s30 = sshll.u32 %s173_s29, 3  ;;  %v275_v18 = vand.u32 4294901760, %v274_v12  ;;  %335 = vmatpush.msra.mxu2 %v274_v12  ;;  %377 = vmatpush.msra.mxu3 %v1130_v7  ;;  %v1148_v19 = vsub.f32 %v207_v10, %v1138_v13  ;;  %v1151_v20 = vsub.f32 %v205_v11, %v1141_v14  ;;  %v281_v22 = vand.u32 4294901760, %v280_v15  ;;  %s843_s7 = sshll.u32 %s164_s6, 5 }
  0x1c   : > { %s175_s5 = scalar_lea.vmem %s1357_s0, %s845_s30  ;;  %v287_v23 = vand.u32 4294901760, %v286_v16  ;;  %v293_v24 = vand.u32 4294901760, %v292_v17  ;;  %236 = vmatpush.msra.mxu0 %v1130_v7  ;;  %v310_v41 = vsub.f32 %v203_v39, %v245_v40  ;;  %v1175_v49 = vsub.f32 %v216_v45, %v1168_v46  ;;  %s1288_s8 = scalar_lea.vmem [#allocation5], %s843_s7 }
  0x1d   : > { %v187_v1 = vld [vmem:[%s175_s5] sm:$0xff]  ;;  %v188_v21 = vld [vmem:[%s175_s5 + $0x8] sm:$0xff]  ;;  %v276_v25 = vsub.f32 %v274_v12, %v275_v18  ;;  %338 = vmatpush.msra.mxu2 %v280_v15  ;;  %v299_v26 = vand.u32 4294901760, %v1148_v19  ;;  %379 = vmatpush.msra.mxu3 %v1132_v8  ;;  %v282_v27 = vsub.f32 %v280_v15, %v281_v22  ;;  %v305_v31 = vand.u32 4294901760, %v1151_v20  ;;  %s1296_s14 = scalar_lea.sflag [#allocation4], %s164_s6  ;;  %p748_p0 = scmp.lt.s32.totalorder (%p1100_p5), %s747_s16, 2 }
  0x1e   : > { %192 = vperm.xlu0 %929, %v187_v1   ;;  %v288_v28 = vsub.f32 %v286_v16, %v287_v23  ;;  %238 = vmatpush.msra.mxu0 %v1132_v8  ;;  %v294_v30 = vsub.f32 %v292_v17, %v293_v24  ;;  %v311_v42 = vand.u32 4294901760, %v310_v41  ;;  %v530_v51 = vand.u32 4294901760, %v1175_v49  ;;  %v206_v1 = vld [vmem:[#allocation2 + $0x18] sm:$0xff] }
  0x1f   : > { %v277_v29 = vand.u32 4294901760, %v276_v25  ;;  %341 = vmatpush.msra.mxu2 %v286_v16  ;;  %v283_v32 = vand.u32 4294901760, %v282_v27  ;;  %381 = vmatpush.msra.mxu3 %v1134_v9  ;;  %v300_v34 = vsub.f32 %v1148_v19, %v299_v26  ;;  %v306_v36 = vsub.f32 %v1151_v20, %v305_v31 }
  0x20   : > { %240 = vmatpush.msra.mxu0 %v1134_v9  ;;  %v289_v33 = vand.u32 4294901760, %v288_v28  ;;  %v295_v35 = vand.u32 4294901760, %v294_v30  ;;  %v312_v43 = vsub.f32 %v310_v41, %v311_v42  ;;  %v1180_v52 = vand.u32 4294901760, %v212_v50 }
  0x21   : > { %278 = vmatpush.msra.mxu1 %v277_v29  ;;  %344 = vmatpush.msra.mxu2 %v292_v17  ;;  %v301_v37 = vand.u32 4294901760, %v300_v34  ;;  %v307_v38 = vand.u32 4294901760, %v306_v36  ;;  %v1183_v53 = vsub.f32 %v214_v47, %v1172_v48  ;;  %v531_v55 = vsub.f32 %v1175_v49, %v530_v51 }
  0x22   : > { %383 = vmatpush.msra.mxu3 %v1138_v13  ;;  %242 = vmatpush.msra.mxu0 %v1138_v13  ;;  %v313_v44 = vand.u32 4294901760, %v312_v43  ;;  %v1191_v57 = vand.u32 4294901760, %v210_v54  ;;  %v1194_v58 = vsub.f32 %v212_v50, %v1180_v52  ;;  %v1202_v63 = vand.u32 4294901760, %v208_v59 }
  0x23   : > { %284 = vmatpush.msra.mxu1 %v283_v32  ;;  %347 = vmatpush.msra.mxu2 %v1148_v19  ;;  %v536_v56 = vand.u32 4294901760, %v1183_v53  ;;  %v532_v60 = vand.u32 4294901760, %v531_v55  ;;  %v1211_v4 = vand.u32 4294901760, %v206_v1  ;;  %vm217_vm0 = vcmask 457728  }
  0x24   : > { %385 = vmatpush.msra.mxu3 %v1141_v14  ;;  %244 = vmatpush.msra.mxu0 %v1141_v14  ;;  %v542_v62 = vand.u32 4294901760, %v1194_v58  ;;  %v1205_v0 = vsub.f32 %v210_v54, %v1191_v57  ;;  %v1214_v5 = vsub.f32 %v208_v59, %v1202_v63 }
  0x25   : > { %290 = vmatpush.msra.mxu1 %v289_v33  ;;  %350 = vmatpush.msra.mxu2 %v1151_v20  ;;  %v537_v61 = vsub.f32 %v1183_v53, %v536_v56  ;;  %v1223_v11 = vsub.f32 %v206_v1, %v1211_v4 }
  0x26   : > { %195 = vperm.xlu0 %929, %v188_v21   ;;  %387 = vmatpush.msra.mxu3 %v245_v40  ;;  %v548_v6 = vand.u32 4294901760, %v1205_v0 }
  0x27   : > { %296 = vmatpush.msra.mxu1 %v295_v35  ;;  %246 = vmatpush.msra.mxu0 %v245_v40  ;;  %v538_v2 = vand.u32 4294901760, %v537_v61 }
  0x28   : > { %353 = vmatpush.msra.mxu2 %v310_v41  ;;  %533 = vmatpush.msrb.mxu3 %v532_v60  ;;  %v549_v12 = vsub.f32 %v1205_v0, %v548_v6 }
  0x29   : > { %302 = vmatpush.msra.mxu1 %v301_v37  ;;  %413 = vmatpush.msrb.mxu0 %v275_v18 }
  0x2a   : > { %489 = vmatpush.msrb.mxu2 %v1168_v46  ;;  %539 = vmatpush.msrb.mxu3 %v538_v2  ;;  %v550_v16 = vand.u32 4294901760, %v549_v12 }
  0x2b   : > { %308 = vmatpush.msra.mxu1 %v307_v38  ;;  %417 = vmatpush.msrb.mxu0 %v281_v22 }
  0x2c   : > { %491 = vmatpush.msrb.mxu2 %v1172_v48 }
  0x2d   : > { %421 = vmatpush.msrb.mxu0 %v287_v23  ;;  %314 = vmatpush.msra.mxu1 %v313_v44  ;;  %v189_v23 = vlaneseq }
  0x2e   : > { %493 = vmatpush.msrb.mxu2 %v1180_v52 }
  0x2f   : > { %425 = vmatpush.msrb.mxu0 %v293_v24  ;;  %457 = vmatpush.msrb.mxu1 %v1128_v3  ;;  %v543_v3 = vsub.f32 %v1194_v58, %v542_v62  ;;  %v190_v24 = vand.u32 127, %v189_v23 }
  0x30   : > { %495 = vmatpush.msrb.mxu2 %v1191_v57 }
  0x31   : > { %429 = vmatpush.msrb.mxu0 %v299_v26  ;;  %459 = vmatpush.msrb.mxu1 %v1130_v7  ;;  %v204_v7 = vld [vmem:[#allocation2 + $0x8] sm:$0xff]  ;;  %v1043_v26 = vmov 0.0  }
  0x32   : > { %497 = vmatpush.msrb.mxu2 %v1202_v63  ;;  %v1220_v10 = vand.u32 4294901760, %v204_v7 }
  0x33   : > { %433 = vmatpush.msrb.mxu0 %v305_v31  ;;  %461 = vmatpush.msrb.mxu1 %v1132_v8  ;;  %v544_v8 = vand.u32 4294901760, %v543_v3 }
  0x34   : > { %499 = vmatpush.msrb.mxu2 %v1211_v4  ;;  %v1234_v15 = vsub.f32 %v204_v7, %v1220_v10 }
  0x35   : > { %437 = vmatpush.msrb.mxu0 %v311_v42  ;;  %463 = vmatpush.msrb.mxu1 %v1134_v9  ;;  %v554_v9 = vand.u32 4294901760, %v1214_v5 }
  0x36   : > { %545 = vmatpush.msrb.mxu3 %v544_v8  ;;  %501 = vmatpush.msrb.mxu2 %v1220_v10  ;;  %v566_v19 = vand.u32 4294901760, %v1234_v15 }
  0x37   : > { %465 = vmatpush.msrb.mxu1 %v1138_v13  ;;  %v555_v13 = vsub.f32 %v1214_v5, %v554_v9 }
  0x38   : > { %551 = vmatpush.msrb.mxu3 %v550_v16  ;;  %v567_v21 = vsub.f32 %v1234_v15, %v566_v19 }
  0x39   : > { %467 = vmatpush.msrb.mxu1 %v1141_v14  ;;  %v560_v14 = vand.u32 4294901760, %v1223_v11  ;;  %v556_v17 = vand.u32 4294901760, %v555_v13 }
  0x3a   : > { %v568_v22 = vand.u32 4294901760, %v567_v21 }
  0x3b   : > { %469 = vmatpush.msrb.mxu1 %v245_v40  ;;  %v561_v18 = vsub.f32 %v1223_v11, %v560_v14  ;;  %557 = vmatpush.msrb.mxu3 %v556_v17 }
  0x3d   : > { %v562_v20 = vand.u32 4294901760, %v561_v18 }
  0x3f   : > { %563 = vmatpush.msrb.mxu3 %v562_v20 }
  0x41   : > { %569 = vmatpush.msrb.mxu3 %v568_v22 }
  0x90   : > { %v193_v25 = vpop.permute.xlu0 %192 }
  0x91   : > { %vm197_vm1 = vcmp.eq.s32.totalorder %v193_v25, %v190_v24 }
  0x92   : > { %v846_v27 = vsel %vm197_vm1, 1.0, %v1043_v26 }
  0x93   : > { %848 = vmatmul.msk.f32.vlgmr.msra.gmra.mxu1 %vm217_vm0, %v846_v27  ;;  %v219_v28 = vsel %vm217_vm0, %v846_v27, 0 }
  0x94   : > { %v248_v29 = vsub.f32 %v219_v28, %v219_v28  ;;  %630 = vmatpush.msra.mxu1 %v1168_v46 }
  0x96   : > { %356 = vmatmul.f32.vlgmr.msra.gmra.mxu2 %v248_v29  ;;  %v249_v30 = vand.u32 4294901760, %v248_v29  ;;  %632 = vmatpush.msra.mxu1 %v1172_v48 }
  0x97   : > { %668 = vmatpush.msra.mxu2 %v530_v51 }
  0x98   : > { %391 = vmatmul.f32.vlgmr.msra.gmra.mxu3 %v249_v30  ;;  %v196_v31 = vpop.permute.xlu0 %195  ;;  %v250_v32 = vsub.f32 %v248_v29, %v249_v30  ;;  %634 = vmatpush.msra.mxu1 %v1180_v52 }
  0x99   : > { %vm198_vm2 = vcmp.eq.s32.totalorder %v196_v31, %v190_v24  ;;  %672 = vmatpush.msra.mxu2 %v536_v56  ;;  %712 = vmatpush.msra.mxu3 %v1168_v46 }
  0x9a   : > { %v847_v33 = vsel %vm198_vm2, 1.0, %v1043_v26  ;;  %v251_v34 = vand.u32 4294901760, %v250_v32  ;;  %636 = vmatpush.msra.mxu1 %v1191_v57 }
  0x9b   : > { %849 = vmatmul.msk.f32.gmra.mxu1 %vm217_vm0, %v847_v33  ;;  %v222_v35 = vsel %vm217_vm0, %v847_v33, 0  ;;  %676 = vmatpush.msra.mxu2 %v542_v62 }
  0x9c   : > { %252 = vmatmul.f32.vlgmr.msra.gmra.mxu0 %v251_v34  ;;  %v256_v36 = vsub.f32 %v222_v35, %v222_v35  ;;  %714 = vmatpush.msra.mxu3 %v1172_v48 }
  0x9d   : > { %590 = vmatpush.msra.mxu0 %v1175_v49  ;;  %638 = vmatpush.msra.mxu1 %v1202_v63 }
  0x9e   : > { %361 = vmatmul.f32.gmra.mxu2 %v256_v36  ;;  %v257_v37 = vand.u32 4294901760, %v256_v36  ;;  %716 = vmatpush.msra.mxu3 %v1180_v52 }
  0x9f   : > { %593 = vmatpush.msra.mxu0 %v1183_v53  ;;  %680 = vmatpush.msra.mxu2 %v548_v6 }
  0xa0   : > { %397 = vmatmul.f32.gmra.mxu3 %v257_v37  ;;  %v258_v38 = vsub.f32 %v256_v36, %v257_v37  ;;  %640 = vmatpush.msra.mxu1 %v1211_v4 }
  0xa1   : > { %596 = vmatpush.msra.mxu0 %v1194_v58  ;;  %684 = vmatpush.msra.mxu2 %v554_v9 }
  0xa2   : > { %v259_v39 = vand.u32 4294901760, %v258_v38  ;;  %718 = vmatpush.msra.mxu3 %v1191_v57  ;;  %642 = vmatpush.msra.mxu1 %v1220_v10 }
  0xa3   : > { %852 = vmatmul.msk.f32.vlgmr.msrb.gmra.mxu1 %vm217_vm0, %v846_v27  ;;  %599 = vmatpush.msra.mxu0 %v1205_v0 }
  0xa4   : > { %260 = vmatmul.f32.gmra.mxu0 %v259_v39  ;;  %688 = vmatpush.msra.mxu2 %v560_v14 }
  0xa5   : > { %720 = vmatpush.msra.mxu3 %v1202_v63  ;;  %602 = vmatpush.msra.mxu0 %v1214_v5 }
  0xa6   : > { %507 = vmatmul.f32.vlgmr.msrb.gmra.mxu2 %v251_v34 }
  0xa7   : > { %692 = vmatpush.msra.mxu2 %v566_v19  ;;  %722 = vmatpush.msra.mxu3 %v1211_v4 }
  0xa8   : > { %854 = vmatmul.msk.f32.vlgmr.msrb.gmra.mxu3 %vm217_vm0, %v846_v27  ;;  %605 = vmatpush.msra.mxu0 %v1223_v11 }
  0xa9   : > { %724 = vmatpush.msra.mxu3 %v1220_v10 }
  0xaa   : > { %608 = vmatpush.msra.mxu0 %v1234_v15 }
  0xab   : > { %853 = vmatmul.msk.f32.gmra.mxu1 %vm217_vm0, %v847_v33 }
  0xac   : > { %850 = vmatmul.msk.f32.vlgmr.msrb.gmra.mxu0 %vm217_vm0, %v846_v27 }
  0xae   : > { %515 = vmatmul.f32.gmra.mxu2 %v259_v39 }
  0xb0   : > { %855 = vmatmul.msk.f32.gmra.mxu3 %vm217_vm0, %v847_v33 }
  0xb3   : > { %646 = vmatmul.f32.vlgmr.msra.gmra.mxu1 %v249_v30 }
  0xb4   : > { %851 = vmatmul.msk.f32.gmra.mxu0 %vm217_vm0, %v847_v33 }
  0xb6   : > { %856 = vmatmul.msk.f32.vlgmr.msra.gmra.mxu2 %vm217_vm0, %v846_v27 }
  0xb8   : > { %858 = vmatmul.msk.f32.vlgmr.msra.gmra.mxu3 %vm217_vm0, %v846_v27 }
  0xbb   : > { %652 = vmatmul.f32.gmra.mxu1 %v257_v37 }
  0xbc   : > { %611 = vmatmul.f32.vlgmr.msra.gmra.mxu0 %v248_v29 }
  0xbe   : > { %857 = vmatmul.msk.f32.gmra.mxu2 %vm217_vm0, %v847_v33 }
  0xc0   : > { %859 = vmatmul.msk.f32.gmra.mxu3 %vm217_vm0, %v847_v33 }
  0xc4   : > { %616 = vmatmul.f32.gmra.mxu0 %v256_v36 }
 0x110   : > { %v317_v40 = vpop.f32.mrf.mxu1 }
 0x118   : > { %v321_v43 = vpop.f32.mrf.mxu1 }
 0x119   : > { %v253_v41 = vpop.f32.mrf.mxu0  ;;  %v357_v42 = vpop.f32.mrf.mxu2 }
 0x11a   : > { %v318_v45 = vadd.f32 %v317_v40, %v253_v41 }
 0x11b   : > { %v392_v44 = vpop.f32.mrf.mxu3 }
 0x11c   : > { %v358_v49 = vadd.f32 %v357_v42, %v318_v45 }
 0x11e   : > { %v393_v51 = vadd.f32 %v392_v44, %v358_v49 }
 0x120   : > { %v472_v50 = vpop.f32.mrf.mxu1 }
 0x121   : > { %v261_v46 = vpop.f32.mrf.mxu0  ;;  %v362_v47 = vpop.f32.mrf.mxu2 }
 0x122   : > { %v322_v52 = vadd.f32 %v321_v43, %v261_v46 }
 0x123   : > { %v398_v48 = vpop.f32.mrf.mxu3 }
 0x124   : > { %v363_v57 = vadd.f32 %v362_v47, %v322_v52 }
 0x126   : > { %v399_v60 = vadd.f32 %v398_v48, %v363_v57 }
 0x128   : > { %v476_v59 = vpop.f32.mrf.mxu1 }
 0x129   : > { %v440_v53 = vpop.f32.mrf.mxu0  ;;  %v508_v54 = vpop.f32.mrf.mxu2 }
 0x12a   : > { %v441_v55 = vadd.f32 %v440_v53, %v393_v51 }
 0x12b   : > { %v572_v56 = vpop.f32.mrf.mxu3 }
 0x12c   : > { %v473_v58 = vadd.f32 %v472_v50, %v441_v55  ;;  %v573_v2 = vadd.f32 %v572_v56, %v508_v54 }
 0x12e   : > { %734 = vst [vmem:[%s1288_s8] sm:$0xff] %v473_v58 }
 0x130   : > { %v647_v3 = vpop.f32.mrf.mxu1 }
 0x131   : > { %v444_v61 = vpop.f32.mrf.mxu0  ;;  %v516_v62 = vpop.f32.mrf.mxu2 }
 0x132   : > { %v445_v63 = vadd.f32 %v444_v61, %v399_v60 }
 0x133   : > { %v576_v0 = vpop.f32.mrf.mxu3 }
 0x134   : > { %v477_v1 = vadd.f32 %v476_v59, %v445_v63  ;;  %v577_v10 = vadd.f32 %v576_v0, %v516_v62 }
 0x136   : > { %736 = vst [vmem:[%s1288_s8 + $0x10] sm:$0xff] %v477_v1 }
 0x138   : > { %v653_v14 = vpop.f32.mrf.mxu1 }
 0x139   : > { %v612_v4 = vpop.f32.mrf.mxu0  ;;  %v695_v6 = vpop.f32.mrf.mxu2 }
 0x13a   : > { %v613_v5 = vadd.f32 %v612_v4, %v573_v2 }
 0x13b   : > { %v727_v8 = vpop.f32.mrf.mxu3 }
 0x13c   : > { %v648_v7 = vadd.f32 %v647_v3, %v613_v5 }
 0x13e   : > { %v696_v9 = vadd.f32 %v695_v6, %v648_v7 }
 0x140   : > { %v728_v11 = vadd.f32 %v727_v8, %v696_v9 }
 0x141   : > { %v617_v12 = vpop.f32.mrf.mxu0  ;;  %v699_v16 = vpop.f32.mrf.mxu2 }
 0x142   : > { %735 = vst [vmem:[%s1288_s8 + $0x8] sm:$0xff] %v728_v11  ;;  %v618_v13 = vadd.f32 %v617_v12, %v577_v10 }
 0x143   : > { %v731_v18 = vpop.f32.mrf.mxu3 }
 0x144   : > { %v654_v15 = vadd.f32 %v653_v14, %v618_v13 }
 0x146   : > { %v700_v17 = vadd.f32 %v699_v16, %v654_v15  ;;  %745 = sbr.rel (!%p1100_p5) target bundleno = 362 (0x16a), region = 36 }
 0x148   : > { %v732_v19 = vadd.f32 %v731_v18, %v700_v17 }
 0x14a   : > { %737 = vst [vmem:[%s1288_s8 + $0x18] sm:$0xff] %v732_v19 }
 0x14b   : > { %s1368_s16 = smov (!%p748_p0, %s747_s16), 2 }
 0x14c   : > { %s871_s17 = sshll.u32 %s1368_s16, 4 }
 0x14d   : > { %s752_s21 = ssub.s32 32, %s871_s17 }
 0x14e   : > { %s753_s22 = sshll.u32 %s752_s21, 4 }
 0x14f   : > { %754 = vsyncadd %s1296_s14, %s753_s22  ;;  %p1305_p1 = scmp.ne.s32.totalorder %s871_s17, 0  ;;  %s873_s19 = sshll.u32 %s1083_s13, 5 }
 0x150   : > { %s758_s26 = scalar_lea.hbm %s1359_s2, %s873_s19  ;;  %s760_s27 = sshll.u32 %s1288_s8, 4  ;;  %s1314_s27 = int_to_ptr.vmem [resolvable:$true] %s760_s27 }
 0x151   : > { %s762_s28 = sshll.u32 %s758_s26, 4  ;;  %s868_s29 = sshll.u32 %s1368_s16, 8  ;;  %s1316_s28 = int_to_ptr.hbm [resolvable:$true] %s762_s28 }
 0x152   : > { %s960_s30 = sshra.s32 %s1314_s27, 4  ;;  %s962_s3 = sshrl.u32 %s868_s29, 4  ;;  %s961_s30 = int_to_ptr.vmem [resolvable:$true] %s960_s30 }
 0x153   : > { %s967_s4 = scalar_lea.vmem %s961_s30, %s962_s3  ;;  %s1044_s13 = smov [#allocation5]  }
 0x154   : > { %p968_p2 = scmp.ne.s32.totalorder %s961_s30, %s967_s4  ;;  %s971_s5 = scalar_lea.vmem %s1044_s13, 64 }
 0x155   : > { %p973_p5 = scmp.lt.s32.totalorder %s971_s5, %s967_s4 }
 0x156   : > { %p969_p3 = pnand %p968_p2, %p1305_p1 }
 0x158   : > { %p970_p4 = pneg %p969_p3 }
 0x15a   : > { %p975_p7 = pnand %p973_p5, %p970_p4 }
 0x15c   : > { %978 = shalt.err (!%p975_p7)
}
 0x15d   : > { %s979_s6 = sshra.s32 %s1316_s28, 4  ;;  %s990_s21 = scalar_lea.hbm %s1359_s2, 48  ;;  %s980_s6 = int_to_ptr.hbm [resolvable:$true] %s979_s6 }
 0x15e   : > { %s986_s7 = scalar_lea.hbm %s980_s6, %s962_s3  ;;  %p991_p11 = scmp.lt.s32.totalorder %s980_s6, %s1359_s2 }
 0x15f   : > { %p987_p8 = scmp.ne.s32.totalorder %s980_s6, %s986_s7  ;;  %p992_p12 = scmp.lt.s32.totalorder %s990_s21, %s986_s7 }
 0x161   : > { %p988_p9 = pnand %p987_p8, %p1305_p1  ;;  %p993_p13 = por %p992_p12, %p991_p11 }
 0x163   : > { %p989_p10 = pneg %p988_p9 }
 0x165   : > { %p994_p0 = pnand %p993_p13, %p989_p10 }
 0x167   : > { %997 = shalt.err (!%p994_p0)
}
 0x168   : > { %s1045_s24 = smov 256   ;;  %s1046_s25 = smov 16  }
 0x169   : > { %768 = dma.vmem_to_hbm [thread:$0]  (%p1305_p1), %s1314_s27, %s868_s29, %s1316_s28, %s1296_s14, %s1045_s24, %s1045_s24, %s1046_s25  }
 0x16a PF: > { %p889_p2 = scmp.ge.s32.totalorder %s1037_s12, 2  ;;  %s777_s26 = sand.u32 1, %s1025_s9  }
 0x16b   : > { %s778_s30 = scalar_lea.sflag [#allocation4], %s777_s26 }
 0x16c   : > { %p884_p3 = pnand %p889_p2, %p1104_p6 }
 0x16e   : > { %p885_p4 = pneg %p884_p3 }
 0x170   : > { %1020 = dma.done.wait (%p885_p4), %s778_s30, 512  }
 0x171   : > { %1022 = vsyncadd (%p885_p4), %s778_s30, 4294966784  ;;  %p13_p5 = scmp.ge.s32.totalorder %s1087_s15, 4   ;;  %s1363_s9 = smov %s1029_s10 }
 0x172   : > { %s1364_s10 = smov %s1033_s11  ;;  %s1365_s11 = smov %s1098_s18 }
 0x173   : > { %s1366_s12 = smov %s1087_s15  ;;  %15 = sbr.rel (!%p13_p5) target bundleno = 4 (0x4), region = 68 }
 0x178   :  { %784 = vsyncpa [#allocation3], 1 }
 0x179   :  { %786 = vsyncpa [#allocation3 + $0x1], 1 }
 0x17a   :  { %787 = vsyncpa [#allocation4], 1 }
 0x17b   :  { %789 = vsyncpa [#allocation4 + $0x1], 1 }

</bundles_post_ra>
